<compile_context>
chip_gen: v7x
topology: tpu7x:2x2x1
jax: 0.10.0
libtpu: 0.0.40
codegen_flags: <defaults>
</compile_context>

<pallas_src>
import functools
import math

import jax
import jax.numpy as jnp
from jax.experimental import pallas as pl
from jax.experimental.pallas import tpu as pltpu


def _pick_tile(n, cap, gran=8):
    """Largest multiple of `gran` that divides n and is <= cap; else the full
    extent (a block dim equal to the array dim is always legal)."""
    t = min(cap, n)
    for cand in range(t - t % gran, 0, -gran):
        if n % cand == 0:
            return cand
    return n


def _cross_atten_kernel(q_ref, kv_ref, wq_ref, wkv_ref, wo_ref, bo_ref, o_ref,
                        *scratch, scale, compute_dtype, cache_kv):
    if cache_kv:
        qp_sc, m_sc, l_sc, acc_sc, kvp_sc = scratch
    else:
        qp_sc, m_sc, l_sc, acc_sc = scratch

    qi = pl.program_id(1)
    ki = pl.program_id(2)
    G, tq, D = qp_sc.shape
    tk = kv_ref.shape[1]
    low_precision = jnp.dtype(compute_dtype).itemsize < 4

    @pl.when(ki == 0)
    def _init():
        # Project this q tile once per (group, q-tile); fold the softmax scale
        # in here and keep it in compute dtype so the MXU consumes it directly
        # every kv step (no per-step casts).
        q = q_ref[...].reshape(G * tq, D).astype(compute_dtype)
        qp = jnp.dot(q, wq_ref[...], preferred_element_type=jnp.float32)
        qp_sc[...] = (qp * scale).astype(compute_dtype).reshape(G, tq, D)
        m_sc[...] = jnp.full_like(m_sc, -jnp.inf)
        l_sc[...] = jnp.zeros_like(l_sc)
        acc_sc[...] = jnp.zeros_like(acc_sc)

    # K/V projection: a single (D, 2D) GEMM (fills the 256-wide MXU on v6e/v7x),
    # split [K | V] along lanes afterwards.
    if cache_kv:
        # Projection only depends on (group, kv-tile): compute it at the first
        # q-tile and cache it in VMEM for all later q-tiles of this group.
        @pl.when(qi == 0)
        def _project_kv():
            kvt = kv_ref[...].reshape(G * tk, D).astype(compute_dtype)
            kvp_f32 = jnp.dot(kvt, wkv_ref[...],
                              preferred_element_type=jnp.float32)
            kvp_sc[ki] = kvp_f32.astype(compute_dtype).reshape(G, tk, 2 * D)
        kvp = kvp_sc[ki]                                     # (G, tk, 2D)
    else:
        kvt = kv_ref[...].reshape(G * tk, D).astype(compute_dtype)
        kvp = jnp.dot(kvt, wkv_ref[...],
                      preferred_element_type=jnp.float32
                      ).astype(compute_dtype).reshape(G, tk, 2 * D)

    k = kvp[..., :D]
    v = kvp[..., D:]

    # Scores: contract the shared D axis directly (no k.T / XLU transpose).
    s = jnp.einsum("gqd,gkd->gqk", qp_sc[...], k,
                   preferred_element_type=jnp.float32)        # (G, tq, tk) f32

    # Online-softmax (flash-style) update with f32 running stats.
    m_new = jnp.maximum(m_sc[...], s.max(axis=-1, keepdims=True))
    alpha = jnp.exp(m_sc[...] - m_new)
    p = jnp.exp(s - m_new)
    l_sc[...] = alpha * l_sc[...] + p.sum(axis=-1, keepdims=True)
    acc_sc[...] = alpha * acc_sc[...] + jnp.einsum(
        "gqk,gkd->gqd", p.astype(compute_dtype), v,
        preferred_element_type=jnp.float32)
    m_sc[...] = m_new

    @pl.when(ki == pl.num_programs(2) - 1)
    def _finalize():
        # EUP reciprocal in the low-precision path; exact divide in f32 mode.
        inv_l = pl.reciprocal(l_sc[...], approx=low_precision)
        attn_out = acc_sc[...] * inv_l                        # (G, tq, D) f32
        # Output projection fused in (to_out Linear). Dropout is identity in
        # inference mode.
        # TODO(synk): training-mode Dropout(0.2) would need pltpu.prng_* masks.
        y = jnp.dot(attn_out.reshape(G * tq, D).astype(compute_dtype),
                    wo_ref[...], preferred_element_type=jnp.float32)
        y = y + bo_ref[...]
        o_ref[...] = y.reshape(G, tq, D).astype(o_ref.dtype)


def cross_atten_pallas(q, kv, wq, wkv, wo, bo, *, scale=None,
                       compute_dtype=jnp.bfloat16, tq_cap=256, tk_cap=None):
    """CrossAtten.forward.

    q:   (B, H, I, D)      kv: (B, H, J, D)
    wq:  (D, D)            wkv: (D, 2D)   [stored as (in, out) = torch W^T, cols = K|V]
    wo:  (D, D)            bo: (D,)
    compute_dtype: bf16 by default (MXU peak on all generations); pass
      jnp.float32 for a near-exact reference mode. Accumulation is f32 always.
    """
    B, H, I, D = q.shape
    Bk, Hk, J, Dk = kv.shape
    assert (B, H, D) == (Bk, Hk, Dk)
    assert wq.shape == (D, D) and wkv.shape == (D, 2 * D)
    assert wo.shape == (D, D) and bo.shape == (D,)
    if scale is None:
        scale = D ** -0.5

    # ---- generation-aware VMEM budget (v5e/v6e: 128 MiB, v7x: 64 MiB) -------
    try:
        info = pltpu.get_tpu_info()
        vmem_cap = int(getattr(info, "vmem_capacity_bytes", 0) or 0)
    except Exception:
        vmem_cap = 0
    if vmem_cap > 0:
        vmem_limit = min(96 << 20, (vmem_cap * 3) // 4)   # 96 MiB / ~48 MiB
    else:
        vmem_limit = 32 << 20                             # conservative fallback
    if tk_cap is None:
        tk_cap = 1024 if vmem_cap >= (100 << 20) else 512

    cdt = jnp.dtype(compute_dtype)
    in_sz = jnp.dtype(q.dtype).itemsize
    out_sz = in_sz
    # bf16 anywhere in the pipeline -> keep sublane tiles multiples of 16.
    gran = 16 if (cdt.itemsize == 2 or in_sz == 2) else 8

    BH = B * H
    q2 = q.reshape(BH, I, D)
    kv2 = kv.reshape(BH, J, D)

    # Pre-cast the weights once: removes per-step VPU casts in the kernel and
    # halves weight DMA / VMEM footprint.
    wq_c = wq.astype(compute_dtype)
    wkv_c = wkv.astype(compute_dtype)
    wo_c = wo.astype(compute_dtype)
    bo2 = bo.reshape(1, D).astype(jnp.float32)

    tq = _pick_tile(I, tq_cap, gran)
    tk = _pick_tile(J, tk_cap, gran)

    # Head-group size G: fold several (batch*head) rows into each projection
    # GEMM so the MXU sees plenty of rows even at tiny I, but keep >= 2 groups
    # so both TensorCores get parallel work on v7x when possible.
    divs = [d for d in range(1, BH + 1) if BH % d == 0]
    cand = [d for d in divs if d * tq <= 1024] or [1]
    G = max(cand)
    while G > 1 and BH // G < 2:
        smaller = [d for d in cand if d < G]
        if not smaller:
            break
        G = max(smaller)

    cache_budget = min(8 << 20, vmem_limit // 4)
    cache_kv = (I // tq > 1) and (G * J * 2 * D * cdt.itemsize <= cache_budget)

    def _vmem_estimate(G_, tq_, tk_, cache_):
        weights = 4 * D * D * cdt.itemsize + D * 4
        blocks = 2 * (G_ * tq_ * D * in_sz +       # q (double buffered)
                      G_ * tk_ * D * in_sz +       # kv
                      G_ * tq_ * D * out_sz +      # out
                      weights)
        scr = (G_ * tq_ * D * cdt.itemsize +       # scaled projected q
               2 * G_ * tq_ * 4 +                  # m, l
               G_ * tq_ * D * 4)                   # f32 accumulator
        if cache_:
            scr += G_ * J * 2 * D * cdt.itemsize   # cached projected K/V
        return blocks + scr

    while _vmem_estimate(G, tq, tk, cache_kv) > (vmem_limit * 4) // 5:
        if tk > gran and _pick_tile(J, tk // 2, gran) < tk:
            tk = _pick_tile(J, tk // 2, gran)
        elif tq > gran and _pick_tile(I, tq // 2, gran) < tq:
            tq = _pick_tile(I, tq // 2, gran)
        elif cache_kv:
            cache_kv = False
        elif G > 1:
            G = max(d for d in divs if d < G)
        else:
            break

    qtiles, ktiles, groups = I // tq, J // tk, BH // G
    grid = (groups, qtiles, ktiles)

    if cache_kv:
        # For q-tiles > 0 the kv block is never read (projected K/V comes from
        # the VMEM cache), so collapse the index to the previous block and let
        # the pipeline's revisit-skip avoid the redundant HBM reads.
        kv_index = lambda g, qi, ki: (g, ki * (1 - jnp.minimum(qi, 1)), 0)
    else:
        kv_index = lambda g, qi, ki: (g, ki, 0)

    in_specs = [
        pl.BlockSpec((G, tq, D), lambda g, qi, ki: (g, qi, 0)),   # q
        pl.BlockSpec((G, tk, D), kv_index),                        # kv
        pl.BlockSpec((D, D), lambda g, qi, ki: (0, 0)),            # Wq
        pl.BlockSpec((D, 2 * D), lambda g, qi, ki: (0, 0)),        # Wkv
        pl.BlockSpec((D, D), lambda g, qi, ki: (0, 0)),            # Wo
        pl.BlockSpec((1, D), lambda g, qi, ki: (0, 0)),            # bo
    ]
    out_spec = pl.BlockSpec((G, tq, D), lambda g, qi, ki: (g, qi, 0))

    scratch = [
        pltpu.VMEM((G, tq, D), compute_dtype),   # scaled projected q
        pltpu.VMEM((G, tq, 1), jnp.float32),     # running max
        pltpu.VMEM((G, tq, 1), jnp.float32),     # running denominator
        pltpu.VMEM((G, tq, D), jnp.float32),     # running numerator (f32)
    ]
    if cache_kv:
        scratch.append(pltpu.VMEM((ktiles, G, tk, 2 * D), compute_dtype))

    # Advisory cost estimate (accounts for KV recomputation when not cached).
    kv_mult = 1 if cache_kv else qtiles
    flops = (2 * BH * I * D * D                       # q projection
             + 2 * BH * J * (2 * D) * D * kv_mult     # k/v projection
             + 4 * BH * I * J * D                     # scores + weighted sum
             + 2 * BH * I * D * D)                    # output projection
    transcendentals = BH * I * J
    bytes_accessed = (q2.size * in_sz
                      + kv2.size * in_sz * kv_mult
                      + (wq_c.size + wkv_c.size + wo_c.size) * cdt.itemsize
                      + bo2.size * 4
                      + BH * I * D * out_sz)

    kernel = functools.partial(_cross_atten_kernel, scale=scale,
                               compute_dtype=compute_dtype, cache_kv=cache_kv)

    out = pl.pallas_call(
        kernel,
        out_shape=jax.ShapeDtypeStruct((BH, I, D), q.dtype),
        grid_spec=pltpu.PrefetchScalarGridSpec(
            num_scalar_prefetch=0,
            grid=grid,
            in_specs=in_specs,
            out_specs=out_spec,
            scratch_shapes=scratch,
        ),
        compiler_params=pltpu.CompilerParams(
            dimension_semantics=(
                "parallel",
                # The VMEM KV cache is filled at qi == 0 and reused for qi > 0,
                # so the q-tile axis must stay on one core when caching.
                "arbitrary" if cache_kv else "parallel",
                "arbitrary"),
            vmem_limit_bytes=vmem_limit,
        ),
        cost_estimate=pl.CostEstimate(
            flops=flops,
            transcendentals=transcendentals,
            bytes_accessed=bytes_accessed,
        ),
    )(q2, kv2, wq_c, wkv_c, wo_c, bo2)

    return out.reshape(B, H, I, D)


def cross_atten_reference(q, kv, wq, wkv, wo, bo, compute_dtype=jnp.float32):
    """Plain-JAX reference with the same (optional) mixed-precision casts."""
    D = q.shape[-1]
    scale = D ** -0.5
    c = lambda x: x.astype(compute_dtype)
    f32 = jnp.float32
    qp = jnp.einsum("bhid,de->bhie", c(q), c(wq),
                    preferred_element_type=f32, precision="highest")
    kvp = jnp.einsum("bhjd,de->bhje", c(kv), c(wkv),
                     preferred_element_type=f32, precision="highest")
    k, v = kvp[..., :D], kvp[..., D:]
    dots = jnp.einsum("bhid,bhjd->bhij", c(qp * scale), c(k),
                      preferred_element_type=f32, precision="highest")
    attn = jax.nn.softmax(dots, axis=-1)
    out = jnp.einsum("bhij,bhjd->bhid", c(attn), c(v),
                     preferred_element_type=f32, precision="highest")
    return jnp.einsum("bhid,de->bhie", c(out), c(wo),
                      preferred_element_type=f32, precision="highest") + bo


if __name__ == "__main__":
    def make_inputs(key, B, H, I, J, D):
        kq, kkv, k1, k2, k3, k4 = jax.random.split(key, 6)
        init = 1.0 / math.sqrt(D)
        q = jax.random.normal(kq, (B, H, I, D), dtype=jnp.float32)
        kv = jax.random.normal(kkv, (B, H, J, D), dtype=jnp.float32)
        wq = jax.random.normal(k1, (D, D), dtype=jnp.float32) * init
        wkv = jax.random.normal(k2, (D, 2 * D), dtype=jnp.float32) * init
        wo = jax.random.normal(k3, (D, D), dtype=jnp.float32) * init
        bo = jax.random.normal(k4, (D,), dtype=jnp.float32) * 0.5
        return q, kv, wq, wkv, wo, bo

    key = jax.random.PRNGKey(0)
    key_a, key_b = jax.random.split(key)

    # --- Test A: small shapes (hdim = 128 keeps every store lane-dense),
    #     f32 compute path, single q/kv tile -------------------------------
    q, kv, wq, wkv, wo, bo = make_inputs(key_a, 2, 2, 8, 16, 128)
    out = jax.block_until_ready(
        cross_atten_pallas(q, kv, wq, wkv, wo, bo, compute_dtype=jnp.float32))
    ref = cross_atten_reference(q, kv, wq, wkv, wo, bo)
    assert out.shape == ref.shape
    err = float(jnp.max(jnp.abs(out - ref)))
    tol = 1e-2 + 2e-2 * float(jnp.max(jnp.abs(ref)))
    assert err < tol, f"f32-mode max abs err {err} (tol {tol})"

    # --- Test B: multi q/kv tiles -> exercises the cached-KV path, the
    #     collapsed kv index map and the default bf16 MXU path -------------
    q, kv, wq, wkv, wo, bo = make_inputs(key_b, 1, 2, 256, 384, 128)
    out = jax.block_until_ready(
        cross_atten_pallas(q, kv, wq, wkv, wo, bo, tq_cap=128, tk_cap=128))
    ref = cross_atten_reference(q, kv, wq, wkv, wo, bo,
                                compute_dtype=jnp.bfloat16)
    assert out.shape == ref.shape
    err = float(jnp.max(jnp.abs(out - ref)))
    tol = 1e-2 + 3e-2 * float(jnp.max(jnp.abs(ref)))
    assert err < tol, f"bf16-mode max abs err {err} (tol {tol})"

    print("KERNEL_OK")
</pallas_src>

<mosaic_0001>
module attributes {stable_mosaic.version = 11 : i64} {
  func.func @_cross_atten_kernel(%arg0: i32, %arg1: i32, %arg2: i32, %arg3: memref<2x8x128xf32, #tpu.memory_space<vmem>>, %arg4: memref<2x16x128xf32, #tpu.memory_space<vmem>>, %arg5: memref<128x128xf32, #tpu.memory_space<vmem>>, %arg6: memref<128x256xf32, #tpu.memory_space<vmem>>, %arg7: memref<128x128xf32, #tpu.memory_space<vmem>>, %arg8: memref<1x128xf32, #tpu.memory_space<vmem>>, %arg9: memref<2x8x128xf32, #tpu.memory_space<vmem>>, %arg10: memref<2x8x128xf32, #tpu.memory_space<vmem>>, %arg11: memref<2x8x1xf32, #tpu.memory_space<vmem>>, %arg12: memref<2x8x1xf32, #tpu.memory_space<vmem>>, %arg13: memref<2x8x128xf32, #tpu.memory_space<vmem>>) attributes {dimension_semantics = [#tpu.dimension_semantics<parallel>, #tpu.dimension_semantics<parallel>, #tpu.dimension_semantics<arbitrary>], iteration_bounds = array<i64: 2, 1, 1>, scalar_prefetch = 0 : i64, scratch_operands = 4 : i64, tpu.core_type = #tpu.core_type<tc>, window_params = [{transform_indices = @transform_0, window_bounds = array<i64: 2, 8, 128>}, {transform_indices = @transform_1, window_bounds = array<i64: 2, 16, 128>}, {pipeline_mode = #tpu.pipeline_mode<synchronous>, transform_indices = @transform_2, window_bounds = array<i64: 128, 128>}, {pipeline_mode = #tpu.pipeline_mode<synchronous>, transform_indices = @transform_3, window_bounds = array<i64: 128, 256>}, {pipeline_mode = #tpu.pipeline_mode<synchronous>, transform_indices = @transform_4, window_bounds = array<i64: 128, 128>}, {pipeline_mode = #tpu.pipeline_mode<synchronous>, transform_indices = @transform_5, window_bounds = array<i64: 1, 128>}, {transform_indices = @transform_6, window_bounds = array<i64: 2, 8, 128>}]} {
    %c0_i32 = arith.constant 0 : i32
    %0 = arith.cmpi eq, %arg2, %c0_i32 : i32
    %1 = arith.extui %0 : i1 to i32
    %c0_i32_0 = arith.constant 0 : i32
    %2 = arith.cmpi ne, %1, %c0_i32_0 : i32
    scf.if %2 {
      %c0_35 = arith.constant 0 : index
      %c0_36 = arith.constant 0 : index
      %c0_37 = arith.constant 0 : index
      %38 = vector.load %arg3[%c0_35, %c0_36, %c0_37] : memref<2x8x128xf32, #tpu.memory_space<vmem>>, vector<2x8x128xf32>
      %39 = vector.shape_cast %38 : vector<2x8x128xf32> to vector<16x128xf32>
      %c0_38 = arith.constant 0 : index
      %c0_39 = arith.constant 0 : index
      %40 = vector.load %arg5[%c0_38, %c0_39] : memref<128x128xf32, #tpu.memory_space<vmem>>, vector<128x128xf32>
      %cst_40 = arith.constant dense<0.000000e+00> : vector<16x128xf32>
      %41 = tpu.matmul %39, %40, %cst_40 {dimension_numbers = #tpu.dot_dimension_numbers<[1], [0], [0], [1], [0, 0, 1, 1], [], []>} : vector<16x128xf32>, vector<128x128xf32>, vector<16x128xf32> -> vector<16x128xf32>
      %cst_41 = arith.constant 0.0883883461 : f32
      %42 = vector.broadcast %cst_41 : f32 to vector<16x128xf32>
      %43 = arith.mulf %41, %42 : vector<16x128xf32>
      %44 = vector.shape_cast %43 : vector<16x128xf32> to vector<2x8x128xf32>
      %c0_42 = arith.constant 0 : index
      %c0_43 = arith.constant 0 : index
      %c0_44 = arith.constant 0 : index
      %45 = vector.load %arg10[%c0_42, %c0_43, %c0_44] : memref<2x8x128xf32, #tpu.memory_space<vmem>>, vector<2x8x128xf32>
      tpu.vector_store %arg10[%c0_42, %c0_43, %c0_44], %44 {strides = array<i32>} : memref<2x8x128xf32, #tpu.memory_space<vmem>>, vector<2x8x128xf32>,
      %cst_45 = arith.constant 0xFF800000 : f32
      %46 = vector.broadcast %cst_45 : f32 to vector<2x8x1xf32>
      %c0_46 = arith.constant 0 : index
      %c0_47 = arith.constant 0 : index
      %c0_48 = arith.constant 0 : index
      %47 = vector.load %arg11[%c0_46, %c0_47, %c0_48] : memref<2x8x1xf32, #tpu.memory_space<vmem>>, vector<2x8x1xf32>
      tpu.vector_store %arg11[%c0_46, %c0_47, %c0_48], %46 {strides = array<i32>} : memref<2x8x1xf32, #tpu.memory_space<vmem>>, vector<2x8x1xf32>,
      %cst_49 = arith.constant 0.000000e+00 : f32
      %48 = vector.broadcast %cst_49 : f32 to vector<2x8x1xf32>
      %c0_50 = arith.constant 0 : index
      %c0_51 = arith.constant 0 : index
      %c0_52 = arith.constant 0 : index
      %49 = vector.load %arg12[%c0_50, %c0_51, %c0_52] : memref<2x8x1xf32, #tpu.memory_space<vmem>>, vector<2x8x1xf32>
      tpu.vector_store %arg12[%c0_50, %c0_51, %c0_52], %48 {strides = array<i32>} : memref<2x8x1xf32, #tpu.memory_space<vmem>>, vector<2x8x1xf32>,
      %cst_53 = arith.constant 0.000000e+00 : f32
      %50 = vector.broadcast %cst_53 : f32 to vector<2x8x128xf32>
      %c0_54 = arith.constant 0 : index
      %c0_55 = arith.constant 0 : index
      %c0_56 = arith.constant 0 : index
      %51 = vector.load %arg13[%c0_54, %c0_55, %c0_56] : memref<2x8x128xf32, #tpu.memory_space<vmem>>, vector<2x8x128xf32>
      tpu.vector_store %arg13[%c0_54, %c0_55, %c0_56], %50 {strides = array<i32>} : memref<2x8x128xf32, #tpu.memory_space<vmem>>, vector<2x8x128xf32>,
    } else {
    }
    %c0 = arith.constant 0 : index
    %c0_1 = arith.constant 0 : index
    %c0_2 = arith.constant 0 : index
    %3 = vector.load %arg4[%c0, %c0_1, %c0_2] : memref<2x16x128xf32, #tpu.memory_space<vmem>>, vector<2x16x128xf32>
    %4 = vector.shape_cast %3 : vector<2x16x128xf32> to vector<32x128xf32>
    %c0_3 = arith.constant 0 : index
    %c0_4 = arith.constant 0 : index
    %5 = vector.load %arg6[%c0_3, %c0_4] : memref<128x256xf32, #tpu.memory_space<vmem>>, vector<128x256xf32>
    %cst = arith.constant dense<0.000000e+00> : vector<32x256xf32>
    %6 = tpu.matmul %4, %5, %cst {dimension_numbers = #tpu.dot_dimension_numbers<[1], [0], [0], [1], [0, 0, 1, 1], [], []>} : vector<32x128xf32>, vector<128x256xf32>, vector<32x256xf32> -> vector<32x256xf32>
    %7 = vector.shape_cast %6 : vector<32x256xf32> to vector<2x16x256xf32>
    %8 = vector.extract_strided_slice %7 {offsets = [0, 0, 0], sizes = [2, 16, 128], strides = [1, 1, 1]} : vector<2x16x256xf32> to vector<2x16x128xf32>
    %9 = vector.extract_strided_slice %7 {offsets = [0, 0, 128], sizes = [2, 16, 128], strides = [1, 1, 1]} : vector<2x16x256xf32> to vector<2x16x128xf32>
    %c0_5 = arith.constant 0 : index
    %c0_6 = arith.constant 0 : index
    %c0_7 = arith.constant 0 : index
    %10 = vector.load %arg10[%c0_5, %c0_6, %c0_7] : memref<2x8x128xf32, #tpu.memory_space<vmem>>, vector<2x8x128xf32>
    "tpu.trace_start"() <{level = 10 : i32, message = "gqd,gkd->gqk"}> : () -> ()
    %cst_8 = arith.constant dense<0.000000e+00> : vector<2x8x16xf32>
    %11 = tpu.matmul %10, %8, %cst_8 {dimension_numbers = #tpu.dot_dimension_numbers<[2], [2], [1], [1], [0, 0, 0, 1, 1, 1], [0], [0]>} : vector<2x8x128xf32>, vector<2x16x128xf32>, vector<2x8x16xf32> -> vector<2x8x16xf32>
    "tpu.trace_stop"() : () -> ()
    %c0_9 = arith.constant 0 : index
    %c0_10 = arith.constant 0 : index
    %c0_11 = arith.constant 0 : index
    %12 = vector.load %arg11[%c0_9, %c0_10, %c0_11] : memref<2x8x1xf32, #tpu.memory_space<vmem>>, vector<2x8x1xf32>
    %cst_12 = arith.constant dense<0xFF800000> : vector<2x8xf32>
    %13 = vector.multi_reduction <maximumf>, %11, %cst_12 [2] : vector<2x8x16xf32> to vector<2x8xf32>
    %14 = vector.shape_cast %13 : vector<2x8xf32> to vector<2x8x1xf32>
    %15 = arith.maximumf %12, %14 : vector<2x8x1xf32>
    %c0_13 = arith.constant 0 : index
    %c0_14 = arith.constant 0 : index
    %c0_15 = arith.constant 0 : index
    %16 = vector.load %arg11[%c0_13, %c0_14, %c0_15] : memref<2x8x1xf32, #tpu.memory_space<vmem>>, vector<2x8x1xf32>
    %17 = arith.subf %16, %15 : vector<2x8x1xf32>
    %18 = math.exp %17 : vector<2x8x1xf32>
    %19 = vector.broadcast %15 : vector<2x8x1xf32> to vector<2x8x16xf32>
    %20 = arith.subf %11, %19 : vector<2x8x16xf32>
    %21 = math.exp %20 : vector<2x8x16xf32>
    %c0_16 = arith.constant 0 : index
    %c0_17 = arith.constant 0 : index
    %c0_18 = arith.constant 0 : index
    %22 = vector.load %arg12[%c0_16, %c0_17, %c0_18] : memref<2x8x1xf32, #tpu.memory_space<vmem>>, vector<2x8x1xf32>
    %23 = arith.mulf %18, %22 : vector<2x8x1xf32>
    %cst_19 = arith.constant dense<0.000000e+00> : vector<2x8xf32>
    %24 = vector.multi_reduction <add>, %21, %cst_19 [2] : vector<2x8x16xf32> to vector<2x8xf32>
    %25 = vector.shape_cast %24 : vector<2x8xf32> to vector<2x8x1xf32>
    %26 = arith.addf %23, %25 : vector<2x8x1xf32>
    %c0_20 = arith.constant 0 : index
    %c0_21 = arith.constant 0 : index
    %c0_22 = arith.constant 0 : index
    %27 = vector.load %arg12[%c0_20, %c0_21, %c0_22] : memref<2x8x1xf32, #tpu.memory_space<vmem>>, vector<2x8x1xf32>
    tpu.vector_store %arg12[%c0_20, %c0_21, %c0_22], %26 {strides = array<i32>} : memref<2x8x1xf32, #tpu.memory_space<vmem>>, vector<2x8x1xf32>,
    %c0_23 = arith.constant 0 : index
    %c0_24 = arith.constant 0 : index
    %c0_25 = arith.constant 0 : index
    %28 = vector.load %arg13[%c0_23, %c0_24, %c0_25] : memref<2x8x128xf32, #tpu.memory_space<vmem>>, vector<2x8x128xf32>
    %29 = vector.broadcast %18 : vector<2x8x1xf32> to vector<2x8x128xf32>
    %30 = arith.mulf %29, %28 : vector<2x8x128xf32>
    "tpu.trace_start"() <{level = 10 : i32, message = "gqk,gkd->gqd"}> : () -> ()
    %cst_26 = arith.constant dense<0.000000e+00> : vector<2x8x128xf32>
    %31 = tpu.matmul %21, %9, %cst_26 {dimension_numbers = #tpu.dot_dimension_numbers<[2], [1], [1], [2], [0, 0, 0, 1, 1, 2], [0], [0]>} : vector<2x8x16xf32>, vector<2x16x128xf32>, vector<2x8x128xf32> -> vector<2x8x128xf32>
    "tpu.trace_stop"() : () -> ()
    %32 = arith.addf %30, %31 : vector<2x8x128xf32>
    %c0_27 = arith.constant 0 : index
    %c0_28 = arith.constant 0 : index
    %c0_29 = arith.constant 0 : index
    %33 = vector.load %arg13[%c0_27, %c0_28, %c0_29] : memref<2x8x128xf32, #tpu.memory_space<vmem>>, vector<2x8x128xf32>
    tpu.vector_store %arg13[%c0_27, %c0_28, %c0_29], %32 {strides = array<i32>} : memref<2x8x128xf32, #tpu.memory_space<vmem>>, vector<2x8x128xf32>,
    %c0_30 = arith.constant 0 : index
    %c0_31 = arith.constant 0 : index
    %c0_32 = arith.constant 0 : index
    %34 = vector.load %arg11[%c0_30, %c0_31, %c0_32] : memref<2x8x1xf32, #tpu.memory_space<vmem>>, vector<2x8x1xf32>
    tpu.vector_store %arg11[%c0_30, %c0_31, %c0_32], %15 {strides = array<i32>} : memref<2x8x1xf32, #tpu.memory_space<vmem>>, vector<2x8x1xf32>,
    %c0_i32_33 = arith.constant 0 : i32
    %35 = arith.cmpi eq, %arg2, %c0_i32_33 : i32
    %36 = arith.extui %35 : i1 to i32
    %c0_i32_34 = arith.constant 0 : i32
    %37 = arith.cmpi ne, %36, %c0_i32_34 : i32
    scf.if %37 {
      %c0_35 = arith.constant 0 : index
      %c0_36 = arith.constant 0 : index
      %c0_37 = arith.constant 0 : index
      %38 = vector.load %arg12[%c0_35, %c0_36, %c0_37] : memref<2x8x1xf32, #tpu.memory_space<vmem>>, vector<2x8x1xf32>
      %39 = tpu.reciprocal %38 : vector<2x8x1xf32> -> vector<2x8x1xf32>
      %c0_38 = arith.constant 0 : index
      %c0_39 = arith.constant 0 : index
      %c0_40 = arith.constant 0 : index
      %40 = vector.load %arg13[%c0_38, %c0_39, %c0_40] : memref<2x8x128xf32, #tpu.memory_space<vmem>>, vector<2x8x128xf32>
      %41 = vector.broadcast %39 : vector<2x8x1xf32> to vector<2x8x128xf32>
      %42 = arith.mulf %40, %41 : vector<2x8x128xf32>
      %43 = vector.shape_cast %42 : vector<2x8x128xf32> to vector<16x128xf32>
      %c0_41 = arith.constant 0 : index
      %c0_42 = arith.constant 0 : index
      %44 = vector.load %arg7[%c0_41, %c0_42] : memref<128x128xf32, #tpu.memory_space<vmem>>, vector<128x128xf32>
      %cst_43 = arith.constant dense<0.000000e+00> : vector<16x128xf32>
      %45 = tpu.matmul %43, %44, %cst_43 {dimension_numbers = #tpu.dot_dimension_numbers<[1], [0], [0], [1], [0, 0, 1, 1], [], []>} : vector<16x128xf32>, vector<128x128xf32>, vector<16x128xf32> -> vector<16x128xf32>
      %c0_44 = arith.constant 0 : index
      %c0_45 = arith.constant 0 : index
      %46 = vector.load %arg8[%c0_44, %c0_45] : memref<1x128xf32, #tpu.memory_space<vmem>>, vector<1x128xf32>
      %47 = vector.broadcast %46 : vector<1x128xf32> to vector<16x128xf32>
      %48 = arith.addf %45, %47 : vector<16x128xf32>
      %49 = vector.shape_cast %48 : vector<16x128xf32> to vector<2x8x128xf32>
      %c0_46 = arith.constant 0 : index
      %c0_47 = arith.constant 0 : index
      %c0_48 = arith.constant 0 : index
      %50 = vector.load %arg9[%c0_46, %c0_47, %c0_48] : memref<2x8x128xf32, #tpu.memory_space<vmem>>, vector<2x8x128xf32>
      tpu.vector_store %arg9[%c0_46, %c0_47, %c0_48], %49 {strides = array<i32>} : memref<2x8x128xf32, #tpu.memory_space<vmem>>, vector<2x8x128xf32>,
    } else {
    }
    return
  }
  func.func @transform_0(%arg0: i32, %arg1: i32, %arg2: i32) -> (i32, i32, i32) {
    %c0_i32 = arith.constant 0 : i32
    %c0_i32_0 = arith.constant 0 : i32
    return %arg0, %arg1, %c0_i32 : i32, i32, i32
  }
  func.func @transform_1(%arg0: i32, %arg1: i32, %arg2: i32) -> (i32, i32, i32) {
    %c0_i32 = arith.constant 0 : i32
    %c0_i32_0 = arith.constant 0 : i32
    return %arg0, %arg2, %c0_i32 : i32, i32, i32
  }
  func.func @transform_2(%arg0: i32, %arg1: i32, %arg2: i32) -> (i32, i32) {
    %c0_i32 = arith.constant 0 : i32
    %c0_i32_0 = arith.constant 0 : i32
    %c0_i32_1 = arith.constant 0 : i32
    return %c0_i32, %c0_i32_0 : i32, i32
  }
  func.func @transform_3(%arg0: i32, %arg1: i32, %arg2: i32) -> (i32, i32) {
    %c0_i32 = arith.constant 0 : i32
    %c0_i32_0 = arith.constant 0 : i32
    %c0_i32_1 = arith.constant 0 : i32
    return %c0_i32, %c0_i32_0 : i32, i32
  }
  func.func @transform_4(%arg0: i32, %arg1: i32, %arg2: i32) -> (i32, i32) {
    %c0_i32 = arith.constant 0 : i32
    %c0_i32_0 = arith.constant 0 : i32
    %c0_i32_1 = arith.constant 0 : i32
    return %c0_i32, %c0_i32_0 : i32, i32
  }
  func.func @transform_5(%arg0: i32, %arg1: i32, %arg2: i32) -> (i32, i32) {
    %c0_i32 = arith.constant 0 : i32
    %c0_i32_0 = arith.constant 0 : i32
    %c0_i32_1 = arith.constant 0 : i32
    return %c0_i32, %c0_i32_0 : i32, i32
  }
  func.func @transform_6(%arg0: i32, %arg1: i32, %arg2: i32) -> (i32, i32, i32) {
    %c0_i32 = arith.constant 0 : i32
    %c0_i32_0 = arith.constant 0 : i32
    return %arg0, %arg1, %c0_i32 : i32, i32, i32
  }
}

</mosaic_0001>

<bundles_post_ra>
// kernel: tpu_custom_call.1
= control target key start
LH: loop header
LB: loop body
LE: loop exit
PB: predicated region body
PF: predicated region fallthrough
CT: control target
= control target key end

     0   :  { %s2338_s0 = inlined_call_operand.hbm [shape: f32[4,8,128], index: 0, kind: input, shape index: {}]   ;;  %s2339_s1 = inlined_call_operand.hbm [shape: f32[4,16,128], index: 1, kind: input, shape index: {}]   ;;  %s2340_s2 = inlined_call_operand.hbm [shape: f32[128,128], index: 2, kind: input, shape index: {}]   ;;  %s2341_s3 = inlined_call_operand.hbm [shape: f32[128,256], index: 3, kind: input, shape index: {}]   ;;  %s2342_s4 = inlined_call_operand.hbm [shape: f32[128,128], index: 4, kind: input, shape index: {}]   ;;  %s2343_s5 = inlined_call_operand.vmem [shape: f32[1,128], index: 5, kind: input, shape index: {}]   ;;  %s2344_s6 = inlined_call_operand.hbm [shape: f32[4,8,128], index: 6, kind: output, shape index: {}]  }
   0x1   :  { %2354 = sst [smem:[#allocation23_spill]] %s2338_s0 }
   0x2   :  { %2355 = sst [smem:[#allocation24_spill]] %s2340_s2 }
   0x3   :  { %2356 = sst [smem:[#allocation25_spill]] %s2341_s3 }
   0x4   :  { %2357 = sst [smem:[#allocation26_spill]] %s2342_s4 }
   0x5   :  { %11 = vsyncpa [#allocation7], 0 }
   0x6   :  { %13 = vsyncpa [#allocation7 + $0x1], 0 }
   0x7   :  { %14 = vsyncpa [#allocation10], 0 }
   0x8   :  { %16 = vsyncpa [#allocation10 + $0x1], 0 }
   0x9   :  { %17 = vsyncpa [#allocation13], 0 }
   0xa   :  { %18 = vsyncpa [#allocation8], 0 }
   0xb   :  { %20 = vsyncpa [#allocation8 + $0x1], 0  ;;  %s1955_s21 = smov 0   ;;  %s1957_s22 = smov 0  }
   0xc   :  { %s1959_s23 = smov 0   ;;  %s1961_s24 = smov 0  }
   0xd   :  { %s1963_s25 = smov 0   ;;  %s1965_s26 = smov 0  }
   0xe LB: > { %s1986_s27 = sadd.s32 4294967295, %s1901_s26   ;;  %s1254_s28 = sadd.s32 4294967294, %s1901_s26   ;;  %s1901_s26 = sphi %s1965_s26, %s26_s26   ;;  %s1897_s25 = sphi %s1963_s25, %s2390_s25   ;;  %s1893_s24 = sphi %s1961_s24, %s2389_s24   ;;  %s1889_s23 = sphi %s1959_s23, %s2388_s23   ;;  %s1885_s22 = sphi %s1957_s22, %s2387_s22   ;;  %s1881_s21 = sphi %s1955_s21, %s2386_s21  }
   0xf   : > { %p67_p0 = scmp.ne.s32.totalorder %s1885_s22, %s1881_s21  ;;  %p2345_p1 = scmp.eq.s32.totalorder %s1986_s27, 0 }
  0x10   : > { %p211_p3 = scmp.eq.s32.totalorder %s1254_s28, 1  ;;  %p1255_p5 = scmp.ge.s32.totalorder %s1901_s26, 1 }
  0x11   : > { %p1995_p4 = por %p2345_p1, %p67_p0  ;;  %p218_p7 = scmp.lt.s32.totalorder %s1901_s26, 3 }
  0x12   : > { %p2000_p6 = por %p211_p3, %p67_p0  ;;  %s1903_s8 = smov [#allocation11]  }
  0x13   : > { %s2358_s29 = scalar_select %p1995_p4, 1, 0 }
  0x14   : > { %s2359_s30 = scalar_select %p2000_p6, 1, 0 }
  0x15   : > { %p2005_p8 = pnand %p1255_p5, %p218_p7  ;;  %s230_s9 = sshll.u32 %s1903_s8, 4  ;;  %s2009_s9 = int_to_ptr.vmem [resolvable:$true] %s230_s9 }
  0x16   : > { %2360 = sst [smem:[#allocation21_spill]] %s2359_s30  ;;  %s1904_s11 = smov [#allocation12]  }
  0x17   : > { %s2361_s7 = scalar_select %p2005_p8, 1, 0 }
  0x18   : > { %p1558_p9 = pneg %p2005_p8  ;;  %s243_s12 = sshll.u32 %s1904_s11, 4  ;;  %s2020_s12 = int_to_ptr.vmem [resolvable:$true] %s243_s12 }
  0x19   : > { %s2363_s2 = sld [smem:[#allocation24_spill]] }
  0x1a   : > { %p2016_p11 = pnand %p1558_p9, %p2345_p1 }
  0x1c   : > { %p2030_p13 = pneg %p2016_p11 }
  0x1f   : > { %s1663_s15 = scalar_lea.hbm %s2363_s2, 2048 }
  0x20   : > { %p1664_p12 = scmp.ne.s32.totalorder %s2363_s2, %s1663_s15  ;;  %p1670_p5 = scmp.lt.u32.totalorder %s1663_s15, %s2363_s2 }
  0x22   : > { %p1666_p0 = pnand %p2030_p13, %p1664_p12 }
  0x24   : > { %p1667_p3 = pneg %p1666_p0 }
  0x26   : > { %p1672_p7 = pnand %p1670_p5, %p1667_p3 }
  0x28   : > { %1675 = shalt.err (!%p1672_p7)
}
  0x29   : > { %s1676_s28 = scalar_lea.vmem %s2009_s9, 2048  ;;  %p1684_p2 = scmp.lt.s32.totalorder %s2009_s9, %s2009_s9 }
  0x2a   : > { %p1677_p9 = scmp.ne.s32.totalorder %s2009_s9, %s1676_s28  ;;  %p1685_p6 = scmp.lt.s32.totalorder %s1676_s28, %s1676_s28 }
  0x2c   : > { %p1679_p10 = pnand %p1677_p9, %p2030_p13  ;;  %p1686_p12 = por %p1685_p6, %p1684_p2 }
  0x2e   : > { %p1680_p1 = pneg %p1679_p10 }
  0x30   : > { %p1687_p0 = pnand %p1686_p12, %p1680_p1 }
  0x32   : > { %1690 = shalt.err (!%p1687_p0)
}
  0x33   : > { %s2347_s8 = smov 128   ;;  %s2349_s11 = smov 8  }
  0x34   : > { %1561 = dma.hbm_to_vmem [thread:$0]  (!%p2016_p11), %s2363_s2, 2048, %s2009_s9, [#allocation10], %s2347_s8, %s2347_s8, %s2349_s11  }
  0x35   : > { %s2365_s3 = sld [smem:[#allocation25_spill]] }
  0x3b   : > { %s1691_s17 = scalar_lea.hbm %s2365_s3, 4096 }
  0x3c   : > { %p1692_p1 = scmp.ne.s32.totalorder %s2365_s3, %s1691_s17  ;;  %p1698_p10 = scmp.lt.u32.totalorder %s1691_s17, %s2365_s3 }
  0x3e   : > { %p1694_p2 = pnand %p1692_p1, %p2030_p13 }
  0x40   : > { %p1695_p6 = pneg %p1694_p2 }
  0x42   : > { %p1700_p3 = pnand %p1698_p10, %p1695_p6 }
  0x44   : > { %1703 = shalt.err (!%p1700_p3)
}
  0x45   : > { %s1704_s9 = scalar_lea.vmem %s2020_s12, 4096  ;;  %p1712_p12 = scmp.lt.s32.totalorder %s2020_s12, %s2020_s12 }
  0x46   : > { %p1705_p5 = scmp.ne.s32.totalorder %s2020_s12, %s1704_s9  ;;  %p1713_p0 = scmp.lt.s32.totalorder %s1704_s9, %s1704_s9 }
  0x48   : > { %p1707_p7 = pnand %p1705_p5, %p2030_p13  ;;  %p1714_p1 = por %p1713_p0, %p1712_p12 }
  0x4a   : > { %p1708_p9 = pneg %p1707_p7 }
  0x4c   : > { %p1715_p2 = pnand %p1714_p1, %p1708_p9 }
  0x4e   : > { %1718 = shalt.err (!%p1715_p2)
}
  0x4f   : > { %s1907_s13 = smov 256   ;;  %s1908_s30 = smov 16  }
  0x50   : > { %1564 = dma.hbm_to_vmem [thread:$0]  (!%p2016_p11), %s2365_s3, 4096, %s2020_s12, [#allocation13], %s1907_s13, %s1907_s13, %s1908_s30  }
  0x51   : > { %s1909_s16 = smov [#allocation14]   ;;  %s2366_s4 = sld [smem:[#allocation26_spill]] }
  0x52   : > { %s256_s17 = sshll.u32 %s1909_s16, 4  ;;  %s257_s17 = int_to_ptr.vmem [resolvable:$true] %s256_s17 }
  0x57   : > { %s1719_s28 = scalar_lea.hbm %s2366_s4, 2048 }
  0x58   : > { %p1720_p6 = scmp.ne.s32.totalorder %s2366_s4, %s1719_s28  ;;  %p1726_p5 = scmp.lt.u32.totalorder %s1719_s28, %s2366_s4 }
  0x5a   : > { %p1722_p10 = pnand %p1720_p6, %p2030_p13 }
  0x5c   : > { %p1723_p3 = pneg %p1722_p10 }
  0x5e   : > { %p1728_p7 = pnand %p1726_p5, %p1723_p3 }
  0x60   : > { %1731 = shalt.err (!%p1728_p7)
}
  0x61   : > { %s1732_s12 = scalar_lea.vmem %s257_s17, 2048  ;;  %p1740_p1 = scmp.lt.s32.totalorder %s257_s17, %s257_s17 }
  0x62   : > { %p1733_p9 = scmp.ne.s32.totalorder %s257_s17, %s1732_s12  ;;  %p1741_p2 = scmp.lt.s32.totalorder %s1732_s12, %s1732_s12 }
  0x64   : > { %p1735_p12 = pnand %p1733_p9, %p2030_p13  ;;  %p1742_p4 = por %p1741_p2, %p1740_p1 }
  0x66   : > { %p1736_p0 = pneg %p1735_p12 }
  0x68   : > { %p1743_p8 = pnand %p1742_p4, %p1736_p0 }
  0x6a   : > { %1746 = shalt.err (!%p1743_p8)
}
  0x6b   : > { %s2367_s8 = smov 8   ;;  %s2368_s13 = smov 128  }
  0x6c   : > { %1567 = dma.hbm_to_vmem [thread:$0]  (!%p2016_p11), %s2366_s4, 2048, %s257_s17, [#allocation13], %s2368_s13, %s2368_s13, %s2367_s8  }
  0x6d   : > { %s45_s18 = sadd.s32 1, %s1897_s25  ;;  %s54_s10 = sadd.s32 1, %s1889_s23 }
  0x6e   : > { %p47_p4 = scmp.ge.s32.totalorder %s45_s18, 2  ;;  %p61_p8 = scmp.ne.s32.totalorder %s1889_s23, %s1885_s22 }
  0x6f   : > { %p62_p13 = scmp.eq.s32.totalorder %s1901_s26, 0  ;;  %p2371_p10 = scmp.eq.s32.totalorder %s1986_s27, 1 }
  0x70   : > { %s2392_s18 = smov (%p47_p4, %s45_s18), 0  ;;  %p1582_p11 = scmp.lt.s32.totalorder %s1901_s26, 2 }
  0x71   : > { %2369 = sst [smem:[#allocation22_spill]] %s2392_s18  ;;  %p2105_p6 = por %p62_p13, %p61_p8 }
  0x72   : > { %p2111_p3 = por %p2371_p10, %p61_p8  ;;  %s49_s15 = ssub.s32 %s1897_s25, %s2392_s18 }
  0x73   : > { %p52_p5 = scmp.eq.s32.totalorder %s49_s15, 0  ;;  %s2119_s16 = sand.u32 1, %s1889_s23  }
  0x74   : > { %s1260_s17 = sshll.u32 %s2119_s16, 4  ;;  %s1282_s20 = sshll.u32 %s1897_s25, 8 }
  0x75   : > { %s2123_s19 = scalar_select %p52_p5, %s1889_s23, %s54_s10  }
  0x76   : > { %s2373_s0 = sld [smem:[#allocation23_spill]]  ;;  %s277_s2 = scalar_lea.vmem [#allocation6], %s1260_s17 }
  0x77   : > { %s285_s11 = sshll.u32 %s277_s2, 4  ;;  %p2135_p7 = pnand %p1582_p11, %p2105_p6  ;;  %s2131_s11 = int_to_ptr.vmem [resolvable:$true] %s285_s11 }
  0x78   : > { %s1263_s3 = sshll.u32 %s2119_s16, 5  ;;  %s274_s28 = scalar_lea.sflag [#allocation7], %s2119_s16 }
  0x79   : > { %p1749_p12 = pneg %p2135_p7 }
  0x7c   : > { %s2129_s12 = scalar_lea.hbm %s2373_s0, %s1282_s20  ;;  %s1752_s30 = scalar_lea.hbm %s2373_s0, 512 }
  0x7d   : > { %s1747_s20 = scalar_lea.hbm %s2129_s12, 256  ;;  %p1753_p2 = scmp.lt.u32.totalorder %s2129_s12, %s2373_s0 }
  0x7e   : > { %p1748_p9 = scmp.ne.s32.totalorder %s2129_s12, %s1747_s20  ;;  %p1754_p4 = scmp.lt.u32.totalorder %s1752_s30, %s1747_s20 }
  0x7f   : > { %p1756_p13 = scmp.lt.u32.totalorder %s1747_s20, %s2129_s12 }
  0x80   : > { %p1750_p0 = pnand %p1749_p12, %p1748_p9  ;;  %p1755_p8 = por %p1754_p4, %p1753_p2 }
  0x82   : > { %p1751_p1 = pneg %p1750_p0  ;;  %p1757_p6 = por %p1756_p13, %p1755_p8 }
  0x84   : > { %p1758_p10 = pnand %p1757_p6, %p1751_p1 }
  0x86   : > { %1761 = shalt.err (!%p1758_p10)
}
  0x87   : > { %s1762_s10 = scalar_lea.vmem %s2131_s11, 256  ;;  %s1910_s17 = smov [#allocation6]  }
  0x88   : > { %p1763_p11 = scmp.ne.s32.totalorder %s2131_s11, %s1762_s10  ;;  %s1767_s9 = sshll.u32 %s1910_s17, 4  ;;  %s1768_s9 = int_to_ptr.vmem [resolvable:$false] %s1767_s9 }
  0x89   : > { %s1769_s4 = scalar_lea.vmem %s1768_s9, 512  ;;  %p1770_p0 = scmp.lt.s32.totalorder %s2131_s11, %s1768_s9 }
  0x8a   : > { %p1765_p5 = pnand %p1763_p11, %p1749_p12  ;;  %p1771_p2 = scmp.lt.s32.totalorder %s1769_s4, %s1762_s10 }
  0x8c   : > { %p1766_p9 = pneg %p1765_p5  ;;  %p1772_p4 = por %p1771_p2, %p1770_p0 }
  0x8e   : > { %p1773_p8 = pnand %p1772_p4, %p1766_p9 }
  0x90   : > { %1776 = shalt.err (!%p1773_p8)
}
  0x91   : > { %1571 = dma.hbm_to_vmem [thread:$0]  (!%p2135_p7), %s2129_s12, 256, %s2131_s11, %s274_s28, %s2368_s13, %s2368_s13, %s2367_s8  }
  0x92   : > { %s1284_s20 = sshll.u32 %s1897_s25, 9  ;;  %s299_s17 = scalar_lea.vmem [#allocation9], %s1263_s3 }
  0x93   : > { %s2176_s2 = scalar_lea.hbm %s2339_s1, %s1284_s20  ;;  %s309_s9 = sshll.u32 %s299_s17, 4  ;;  %s2180_s9 = int_to_ptr.vmem [resolvable:$true] %s309_s9 }
  0x94   : > { %s2375_s4 = sand.u32 1, %s1901_s26   ;;  %s1777_s18 = scalar_lea.hbm %s2176_s2, 512 }
  0x95   : > { %s2184_s0 = scalar_lea.sflag [#allocation10], %s2375_s4  ;;  %p1778_p1 = scmp.ne.s32.totalorder %s2176_s2, %s1777_s18 }
  0x96   : > { %s1782_s16 = scalar_lea.hbm %s2339_s1, 1024  ;;  %p1783_p10 = scmp.lt.u32.totalorder %s2176_s2, %s2339_s1 }
  0x97   : > { %p1780_p13 = pnand %p1778_p1, %p1749_p12  ;;  %p1784_p11 = scmp.lt.u32.totalorder %s1782_s16, %s1777_s18 }
  0x98   : > { %p1786_p9 = scmp.lt.u32.totalorder %s1777_s18, %s2176_s2 }
  0x99   : > { %p1781_p6 = pneg %p1780_p13  ;;  %p1785_p5 = por %p1784_p11, %p1783_p10 }
  0x9b   : > { %p1787_p0 = por %p1786_p9, %p1785_p5 }
  0x9d   : > { %p1788_p2 = pnand %p1787_p0, %p1781_p6 }
  0x9f   : > { %1791 = shalt.err (!%p1788_p2)
}
  0xa0   : > { %s1792_s3 = scalar_lea.vmem %s2180_s9, 512  ;;  %s1911_s30 = smov [#allocation9]  }
  0xa1   : > { %p1793_p4 = scmp.ne.s32.totalorder %s2180_s9, %s1792_s3  ;;  %s1797_s10 = sshll.u32 %s1911_s30, 4  ;;  %s1798_s10 = int_to_ptr.vmem [resolvable:$false] %s1797_s10 }
  0xa2   : > { %s1799_s17 = scalar_lea.vmem %s1798_s10, 1024  ;;  %p1800_p13 = scmp.lt.s32.totalorder %s2180_s9, %s1798_s10 }
  0xa3   : > { %p1795_p8 = pnand %p1793_p4, %p1749_p12  ;;  %p1801_p10 = scmp.lt.s32.totalorder %s1799_s17, %s1792_s3 }
  0xa5   : > { %p1796_p1 = pneg %p1795_p8  ;;  %p1802_p11 = por %p1801_p10, %p1800_p13 }
  0xa7   : > { %p1803_p5 = pnand %p1802_p11, %p1796_p1 }
  0xa9   : > { %1806 = shalt.err (!%p1803_p5)
}
  0xaa   : > { %1574 = dma.hbm_to_vmem [thread:$0]  (!%p2135_p7), %s2176_s2, 512, %s2180_s9, %s2184_s0, %s2368_s13, %s2368_s13, %s2367_s8  }
  0xab   : > { %p2376_p12 = scmp.ne.s32.totalorder %s2361_s7, 0 }
  0xac   : > { %s2216_s18 = sand.u32 (!%p2376_p12), 1, %s1885_s22   ;;  %p2377_p6 = scmp.ne.s32.totalorder (!%p2376_p12), %s2358_s29, 0 }
  0xad   : > { %321 = sbr.rel (%p2376_p12) target bundleno = 1482 (0x5ca), region = 44  ;;  %s1268_s4 = sshll.u32 (!%p2376_p12), %s2216_s18, 4 }
  0xae   : > { %s324_s12 = scalar_lea.sflag (!%p2376_p12), [#allocation7], %s2216_s18  ;;  %s2222_s15 = scalar_lea.vmem (!%p2376_p12), [#allocation6], %s1268_s4 }
  0xb4   : > { %1860 = dma.done.wait (%p2377_p6), %s324_s12, 256  }
  0xb5   : > { %1862 = vsyncadd (%p2377_p6), %s324_s12, 4294967040  ;;  %s332_s0 = sand.u32 1, %s1986_s27   ;;  %s1269_s7 = sshll.u32 %s2216_s18, 5 }
  0xb6   : > { %s333_s8 = scalar_lea.sflag [#allocation10], %s332_s0  ;;  %s2230_s13 = scalar_lea.vmem [#allocation9], %s1269_s7 }
  0xb7   : > { %1864 = dma.done.wait (%p2377_p6), %s333_s8, 512  }
  0xb8   : > { %1866 = vsyncadd (%p2377_p6), %s333_s8, 4294966784  ;;  %p2378_p7 = scmp.eq.s32.totalorder %s1986_s27, 0 }
  0xba   : > { %1868 = dma.done.wait (%p2378_p7), [#allocation10], 2048   ;;  %p2379_p9 = pmov %p2378_p7 }
  0xbb   : > { %p2380_p0 = pmov %p2378_p7 }
  0xbc   : > { %1870 = vsyncadd (%p2379_p9), [#allocation10], 4294965248 }
  0xbd   : > { %1872 = dma.done.wait (%p2380_p0), [#allocation13], 6144   ;;  %p2381_p2 = pmov %p2380_p0 }
  0xbe   : > { %v1912_v0 = vmov 0.0   ;;  %v499_v1 = vld [vmem:[#allocation12 + $0x8] sm:$0xff]  ;;  %v501_v2 = vld [vmem:[#allocation12 + $0x18] sm:$0xff]  ;;  %v498_v3 = vld [vmem:[#allocation12] sm:$0xff]  ;;  %vm1914_vm0 = vmmov 0   ;;  %vm487_vm1 = vcmask 7168  }
  0xbf   : > { %1874 = vsyncadd (%p2381_p2), [#allocation13], 4294961152  ;;  %594 = vmatprep.mubr.f32.mxu1 %v1912_v0  ;;  %v1464_v4 = vpack.c.bf16 %v501_v2, %v499_v1  ;;  %v500_v5 = vld [vmem:[#allocation12 + $0x10] sm:$0xff]  ;;  %v503_v6 = vld [vmem:[#allocation12 + $0x28] sm:$0xff]  ;;  %490 = vst.msk [vmem:[#allocation4] sm:$0xff] %vm487_vm1, %v1912_v0  ;;  %vm763_vm2 = vcmask 130048  }
  0xc0   : > { %v505_v7 = vld [vmem:[#allocation12 + $0x38] sm:$0xff]  ;;  %v1466_v8 = vpack.c.bf16 %v500_v5, %v498_v3  ;;  %v502_v10 = vld [vmem:[#allocation12 + $0x20] sm:$0xff]  ;;  %v504_v11 = vld [vmem:[#allocation12 + $0x30] sm:$0xff]  ;;  %491 = vst.msk [vmem:[#allocation4 + $0x8] sm:$0xff] %vm487_vm1, %v1912_v0  ;;  %s381_s27 = scalar_lea.vmem [#allocation15], %s1268_s4  ;;  %s1285_s11 = sshll.u32 %s1893_s24, 8 }
  0xc1   : > { %v1468_v9 = vpack.c.bf16 %v505_v7, %v503_v6  ;;  %v507_v12 = vld [vmem:[#allocation12 + $0x48] sm:$0xff]  ;;  %1465 = vmatprep.subr.bf16.mxu1 %v1464_v4  ;;  %v509_v13 = vld [vmem:[#allocation12 + $0x58] sm:$0xff]  ;;  %v1470_v14 = vpack.c.bf16 %v504_v11, %v502_v10  ;;  %v392_v15 = vld [vmem:[#allocation11] sm:$0xff]  ;;  %s1111_s29 = sshll.u32 %s381_s27, 4  ;;  %s2289_s20 = scalar_lea.hbm %s2344_s6, %s1285_s11  ;;  %s2284_s29 = int_to_ptr.vmem [resolvable:$true] %s1111_s29 }
  0xc2   : > { %1467 = vmatpush1.bf16.msra.mxu1 %v1466_v8  ;;  %v393_v16 = vld [vmem:[#allocation11 + $0x8] sm:$0xff]  ;;  %v1472_v17 = vpack.c.bf16 %v509_v13, %v507_v12  ;;  %v506_v18 = vld [vmem:[#allocation12 + $0x40] sm:$0xff]  ;;  %v508_v19 = vld [vmem:[#allocation12 + $0x50] sm:$0xff]  ;;  %s1097_s3 = scalar_lea.sflag [#allocation8], %s2216_s18  ;;  %s1807_s30 = scalar_lea.vmem %s2284_s29, 256 }
  0xc3   : > { %1469 = vmatprep.subr.bf16.mxu1 %v1468_v9  ;;  %v1432_v20 = vpack.c.bf16 %v393_v16, %v392_v15  ;;  %v511_v21 = vld [vmem:[#allocation12 + $0x68] sm:$0xff]  ;;  %v513_v22 = vld [vmem:[#allocation12 + $0x78] sm:$0xff]  ;;  %v394_v23 = vld [vmem:[#allocation11 + $0x10] sm:$0xff]  ;;  %v1474_v26 = vpack.c.bf16 %v508_v19, %v506_v18  ;;  %v1913_v16 = vmov 0.0|0.0   ;;  %p1808_p4 = scmp.ne.s32.totalorder %s2284_s29, %s1807_s30  ;;  %s1917_s24 = smov [#allocation15]  }
  0xc4   : > { %v395_v24 = vld [vmem:[#allocation11 + $0x18] sm:$0xff]  ;;  %v396_v27 = vld [vmem:[#allocation11 + $0x20] sm:$0xff]  ;;  %v397_v28 = vld [vmem:[#allocation11 + $0x28] sm:$0xff]  ;;  %v1476_v29 = vpack.c.bf16 %v513_v22, %v511_v21  ;;  %s1811_s10 = sshll.u32 %s1917_s24, 4  ;;  %s1812_s10 = int_to_ptr.vmem [resolvable:$false] %s1811_s10 }
  0xc5   : > { %1433 = vmatprep.subr.bf16.mxu0 %v1432_v20  ;;  %v1436_v25 = vpack.c.bf16 %v395_v24, %v394_v23  ;;  %v510_v30 = vld [vmem:[#allocation12 + $0x60] sm:$0xff]  ;;  %v512_v31 = vld [vmem:[#allocation12 + $0x70] sm:$0xff]  ;;  %v515_v32 = vld [vmem:[#allocation12 + $0x88] sm:$0xff]  ;;  %v1440_v33 = vpack.c.bf16 %v397_v28, %v396_v27  ;;  %p1809_p8 = pnand %p1808_p4, %p2111_p3  ;;  %s1813_s17 = scalar_lea.vmem %s1812_s10, 512 }
  0xc6   : > { %1471 = vmatpush1.bf16.msra.mxu1 %v1470_v14  ;;  %1435 = vmatpush3.bf16.msra.mxu0 %v1432_v20  ;;  %v517_v34 = vld [vmem:[#allocation12 + $0x98] sm:$0xff]  ;;  %v398_v35 = vld [vmem:[#allocation11 + $0x30] sm:$0xff]  ;;  %v1478_v37 = vpack.c.bf16 %v512_v31, %v510_v30  ;;  %v514_v39 = vld [vmem:[#allocation12 + $0x80] sm:$0xff]  ;;  %p1814_p13 = scmp.lt.s32.totalorder %s2284_s29, %s1812_s10  ;;  %p1815_p10 = scmp.lt.s32.totalorder %s1813_s17, %s1807_s30 }
  0xc7   : > { %1473 = vmatprep.subr.bf16.mxu1 %v1472_v17  ;;  %1437 = vmatprep.subr.bf16.mxu0 %v1436_v25  ;;  %v399_v36 = vld [vmem:[#allocation11 + $0x38] sm:$0xff]  ;;  %v1480_v38 = vpack.c.bf16 %v517_v34, %v515_v32  ;;  %v516_v40 = vld [vmem:[#allocation12 + $0x90] sm:$0xff]  ;;  %v519_v41 = vld [vmem:[#allocation12 + $0xa8] sm:$0xff]  ;;  %p1810_p1 = pneg %p1809_p8 }
  0xc8   : > { %v1444_v42 = vpack.c.bf16 %v399_v36, %v398_v35  ;;  %v521_v43 = vld [vmem:[#allocation12 + $0xb8] sm:$0xff]  ;;  %v400_v44 = vld [vmem:[#allocation11 + $0x40] sm:$0xff]  ;;  %v401_v45 = vld [vmem:[#allocation11 + $0x48] sm:$0xff]  ;;  %v1482_v46 = vpack.c.bf16 %v516_v40, %v514_v39  ;;  %v1916_v40 = vmov 0   ;;  %p1816_p11 = por %p1815_p10, %p1814_p13 }
  0xc9   : > { %v518_v47 = vld [vmem:[#allocation12 + $0xa0] sm:$0xff]  ;;  %v1484_v48 = vpack.c.bf16 %v521_v43, %v519_v41  ;;  %v520_v49 = vld [vmem:[#allocation12 + $0xb0] sm:$0xff]  ;;  %v523_v50 = vld [vmem:[#allocation12 + $0xc8] sm:$0xff]  ;;  %v1448_v51 = vpack.c.bf16 %v401_v45, %v400_v44  ;;  %1649 = vset.pattern.permute.xlu1 %v1916_v40  ;;  %1650 = vset.pattern.permute.xlu0 %v1916_v40 }
  0xca   : > { %1475 = vmatpush1.bf16.msra.mxu1 %v1474_v26  ;;  %1439 = vmatpush3.bf16.msra.mxu0 %v1436_v25  ;;  %v390_v52 = vld [vmem:[%s2222_s15] sm:$0xff]  ;;  %v525_v53 = vld [vmem:[#allocation12 + $0xd8] sm:$0xff]  ;;  %v1486_v56 = vpack.c.bf16 %v520_v49, %v518_v47  ;;  %v527_v60 = vld [vmem:[#allocation12 + $0xe8] sm:$0xff]  ;;  %p1817_p5 = pnand %p1816_p11, %p1810_p1 }
  0xcb   : > { %1477 = vmatprep.subr.bf16.mxu1 %v1476_v29  ;;  %1441 = vmatprep.subr.bf16.mxu0 %v1440_v33  ;;  %v402_v54 = vld [vmem:[#allocation11 + $0x50] sm:$0xff]  ;;  %v403_v55 = vld [vmem:[#allocation11 + $0x58] sm:$0xff]  ;;  %v1488_v57 = vpack.c.bf16 %v525_v53, %v523_v50  ;;  %v522_v58 = vld [vmem:[#allocation12 + $0xc0] sm:$0xff] }
  0xcc   : > { %1366 = vmatprep.mubr.f32.mxu0 %v390_v52  ;;  %v524_v59 = vld [vmem:[#allocation12 + $0xd0] sm:$0xff]  ;;  %v1452_v61 = vpack.c.bf16 %v403_v55, %v402_v54  ;;  %v529_v62 = vld [vmem:[#allocation12 + $0xf8] sm:$0xff]  ;;  %v404_v63 = vld [vmem:[#allocation11 + $0x60] sm:$0xff] }
  0xcd   : > { %v405_v1 = vld [vmem:[#allocation11 + $0x68] sm:$0xff]  ;;  %v1490_v2 = vpack.c.bf16 %v524_v59, %v522_v58  ;;  %v1492_v3 = vpack.c.bf16 %v529_v62, %v527_v60  ;;  %v526_v4 = vld [vmem:[#allocation12 + $0xe0] sm:$0xff]  ;;  %v528_v5 = vld [vmem:[#allocation12 + $0xf0] sm:$0xff] }
  0xce   : > { %1479 = vmatpush1.bf16.msra.mxu1 %v1478_v37  ;;  %1443 = vmatpush3.bf16.msra.mxu0 %v1440_v33  ;;  %v1456_v6 = vpack.c.bf16 %v405_v1, %v404_v63  ;;  %v406_v7 = vld [vmem:[#allocation11 + $0x70] sm:$0xff]  ;;  %v407_v8 = vld [vmem:[#allocation11 + $0x78] sm:$0xff]  ;;  %v1494_v9 = vpack.c.bf16 %v528_v5, %v526_v4  ;;  %v494_v11 = vld [vmem:[%s2230_s13] sm:$0xff]  ;;  %v1915_v33 = vmov -inf  }
  0xcf   : > { %1481 = vmatprep.subr.bf16.mxu1 %v1480_v38  ;;  %1445 = vmatprep.subr.bf16.mxu0 %v1444_v42  ;;  %v1460_v10 = vpack.c.bf16 %v407_v8, %v406_v7  ;;  %v495_v12 = vld [vmem:[%s2230_s13 + $0x8] sm:$0xff]  ;;  %v496_v14 = vld [vmem:[%s2230_s13 + $0x10] sm:$0xff]  ;;  %v497_v15 = vld [vmem:[%s2230_s13 + $0x18] sm:$0xff]  ;;  %488 = vst.msk [vmem:[#allocation3] sm:$0xff] %vm487_vm1, %v1915_v33 }
  0xd0   : > { %v391_v13 = vld [vmem:[%s2222_s15 + $0x8] sm:$0xff]  ;;  %489 = vst.msk [vmem:[#allocation3 + $0x8] sm:$0xff] %vm487_vm1, %v1915_v33  ;;  %v996_v63 = vld [vmem:[#allocation14] sm:$0xff]  ;;  %v1002_v8 = vld [vmem:[#allocation14 + $0x30] sm:$0xff] }
  0xd1   : > { %v997_v1 = vld [vmem:[#allocation14 + $0x8] sm:$0xff]  ;;  %v999_v4 = vld [vmem:[#allocation14 + $0x18] sm:$0xff]  ;;  %v1000_v5 = vld [vmem:[#allocation14 + $0x20] sm:$0xff] }
  0xd2   : > { %1483 = vmatpush1.bf16.msra.mxu1 %v1482_v46  ;;  %1447 = vmatpush3.bf16.msra.mxu0 %v1444_v42 }
  0xd3   : > { %1485 = vmatprep.subr.bf16.mxu1 %v1484_v48  ;;  %1449 = vmatprep.subr.bf16.mxu0 %v1448_v51 }
  0xd6   : > { %1487 = vmatpush1.bf16.msra.mxu1 %v1486_v56  ;;  %1451 = vmatpush3.bf16.msra.mxu0 %v1448_v51  ;;  %v761_v41 = vld [vmem:[#allocation3] sm:$0xff] }
  0xd7   : > { %1489 = vmatprep.subr.bf16.mxu1 %v1488_v57  ;;  %1453 = vmatprep.subr.bf16.mxu0 %v1452_v61  ;;  %v762_v45 = vld [vmem:[#allocation3 + $0x8] sm:$0xff] }
  0xda   : > { %1491 = vmatpush1.bf16.msra.mxu1 %v1490_v2  ;;  %1455 = vmatpush3.bf16.msra.mxu0 %v1452_v61  ;;  %v998_v2 = vld [vmem:[#allocation14 + $0x10] sm:$0xff] }
  0xdb   : > { %1493 = vmatprep.subr.bf16.mxu1 %v1492_v3  ;;  %1457 = vmatprep.subr.bf16.mxu0 %v1456_v6  ;;  %v1508_v3 = vpack.c.bf16 %v997_v1, %v996_v63 }
  0xde   : > { %1495 = vmatpush1.bf16.msra.mxu1 %v1494_v9  ;;  %1459 = vmatpush3.bf16.msra.mxu0 %v1456_v6  ;;  %v1001_v6 = vld [vmem:[#allocation14 + $0x28] sm:$0xff]  ;;  %v1003_v9 = vld [vmem:[#allocation14 + $0x38] sm:$0xff] }
  0xdf   : > { %1461 = vmatprep.subr.bf16.mxu0 %v1460_v10  ;;  %1509 = vmatprep.subr.bf16.mxu1 %v1508_v3  ;;  %v1516_v7 = vpack.c.bf16 %v1001_v6, %v1000_v5 }
  0xe1   : > { %595 = vmatmul.mubr.f32.vlgmr.msra.gmra.mrb[0].mxu1 %v494_v11  ;;  %v1004_v11 = vld [vmem:[#allocation14 + $0x40] sm:$0xff] }
  0xe2   : > { %600 = vmatprep.mubr.f32.mxu1 %v1912_v0  ;;  %1463 = vmatpush3.bf16.msra.mxu0 %v1460_v10  ;;  %v1520_v10 = vpack.c.bf16 %v1003_v9, %v1002_v8 }
  0xe3   : > { %1496 = vmatprep.subr.bf16.mxu0 %v1913_v16  ;;  %1511 = vmatpush3.bf16.msra.mxu1 %v1508_v3 }
  0xe5   : > { %601 = vmatmul.mubr.f32.gmra.mrb[2].mxu1 %v495_v12  ;;  %1367 = vmatmul.mubr.f32.vlgmr.msra.gmra.mrb[0].mxu0 %v391_v13  ;;  %v1005_v12 = vld [vmem:[#allocation14 + $0x48] sm:$0xff] }
  0xe6   : > { %606 = vmatprep.mubr.f32.mxu1 %v1912_v0  ;;  %1373 = vmatprep.mubr.msk.f32.mxu0 %vm1914_vm0, %v1912_v0  ;;  %v1524_v13 = vpack.c.bf16 %v1005_v12, %v1004_v11 }
  0xe9   : > { %607 = vmatmul.mubr.f32.gmra.mrb[4].mxu1 %v496_v14  ;;  %v1006_v14 = vld [vmem:[#allocation14 + $0x50] sm:$0xff] }
  0xea   : > { %612 = vmatprep.mubr.f32.mxu1 %v1912_v0 }
  0xed   : > { %613 = vmatmul.mubr.f32.gmra.mrb[6].mxu1 %v497_v15  ;;  %v1007_v15 = vld [vmem:[#allocation14 + $0x58] sm:$0xff] }
 0x1b4   : > { %v596_v17 = vpop.f32.mrb[0].mxu1 }
 0x1b5   : > { %v598_v18 = vpop.f32.mrb[1].mxu1 }
 0x1b8   : > { %v602_v19 = vpop.f32.mrb[2].mxu1  ;;  %v1368_v20 = vpop.f32.mrb[0].mxu0 }
 0x1b9   : > { %v1497_v21 = vpack.c.bf16 %v602_v19, %v596_v17  ;;  %v604_v22 = vpop.f32.mrb[3].mxu1  ;;  %v474_v23 = vpop.f32.mrb[1].mxu0  ;;  %v484_v32 = vmul.f32 0.088388346, %v1368_v20  ;;  %v794_v17 = vld [vmem:[#allocation4] sm:$0xff] }
 0x1ba   : > { %v1503_v24 = vpack.c.bf16 %v604_v22, %v598_v18  ;;  %v483_v27 = vmul.f32 0.088388346, %v474_v23 }
 0x1bb   : > { %1498 = vmatpush3.bf16.xpose.msra.mxu0 %v1497_v21  ;;  %v795_v21 = vld [vmem:[#allocation4 + $0x8] sm:$0xff] }
 0x1bc   : > { %v608_v25 = vpop.f32.mrb[4].mxu1  ;;  %1499 = vmatprep.subr.bf16.mxu0 %v1913_v16 }
 0x1bd   : > { %v610_v26 = vpop.f32.mrb[5].mxu1 }
 0x1c0   : > { %v614_v28 = vpop.f32.mrb[6].mxu1 }
 0x1c1   : > { %v1500_v29 = vpack.c.bf16 %v614_v28, %v608_v25  ;;  %v616_v30 = vpop.f32.mrb[7].mxu1  ;;  %v1008_v28 = vld [vmem:[#allocation14 + $0x60] sm:$0xff] }
 0x1c2   : > { %v1506_v31 = vpack.c.bf16 %v616_v30, %v610_v26  ;;  %1374 = vmatmul.mubr.f32.vlgmr.msra.gmra.mrb[2].mxu0 %v483_v27 }
 0x1c3   : > { %1501 = vmatpush3.bf16.xpose.msra.mxu0 %v1500_v29  ;;  %1380 = vmatprep.mubr.msk.f32.mxu0 %vm1914_vm0, %v1912_v0  ;;  %v1009_v29 = vld [vmem:[#allocation14 + $0x68] sm:$0xff] }
 0x1c4   : > { %1502 = vmatprep.subr.bf16.mxu0 %v1913_v16  ;;  %v1532_v30 = vpack.c.bf16 %v1009_v29, %v1008_v28 }
 0x1ca   : > { %1381 = vmatmul.mubr.f32.vlgmr.msra.gmra.mrb[4].mxu0 %v484_v32  ;;  %v1011_v32 = vld [vmem:[#allocation14 + $0x78] sm:$0xff] }
 0x1cb   : > { %1504 = vmatpush3.bf16.msra.mxu0 %v1503_v24  ;;  %1387 = vmatprep.mubr.msk.f32.mxu0 %vm1914_vm0, %v1912_v0 }
 0x1cc   : > { %1505 = vmatprep.subr.bf16.mxu0 %v1913_v16  ;;  %v1528_v16 = vpack.c.bf16 %v1007_v15, %v1006_v14 }
 0x295   : > { %v687_v34 = vpop.f32.mrb[2].mxu0 }
 0x296   : > { %v1375_v35 = vpop.f32.mrb[3].mxu0  ;;  %v764_v36 = vsel %vm763_vm2, %v687_v34, -inf }
 0x297   : > { %765 = vmax.xlane.f32.xlu0 %v764_v36 }
 0x29d   : > { %v757_v37 = vpop.f32.mrb[4].mxu0 }
 0x29e   : > { %v1382_v38 = vpop.f32.mrb[5].mxu0  ;;  %v767_v39 = vsel %vm763_vm2, %v757_v37, -inf }
 0x29f   : > { %768 = vmax.xlane.f32.xlu0 %v767_v39 }
 0x324   : > { %v766_v42 = vpop.xlane.xlu0 %765 }
 0x325   : > { %v770_v43 = vmax.f32 %v761_v41, %v766_v42 }
 0x327   : > { %v772_v44 = vsub.f32 %v761_v41, %v770_v43  ;;  %973 = vst.msk [vmem:[#allocation3] sm:$0xff] %vm487_vm1, %v770_v43  ;;  %780 = vperm.xlu1 %1649, %v770_v43  }
 0x329   : > { %v774_v58 = vmul.f32 1.442695, %v772_v44 }
 0x32c   : > { %v769_v46 = vpop.xlane.xlu0 %768 }
 0x32d   : > { %v771_v47 = vmax.f32 %v762_v45, %v769_v46 }
 0x32f   : > { %v773_v48 = vsub.f32 %v762_v45, %v771_v47  ;;  %974 = vst.msk [vmem:[#allocation3 + $0x8] sm:$0xff] %vm487_vm1, %v771_v47  ;;  %785 = vperm.xlu1 %1649, %v771_v47  }
 0x331   : > { %v776_v60 = vmul.f32 1.442695, %v773_v48 }
 0x3a6   : > { %v781_v49 = vpop.permute.xlu1 %780 }
 0x3a7   : > { %v788_v50 = vsub.f32 %v687_v34, %v781_v49  ;;  %v1276_v49 = vld [vmem:[%s2343_s5] ss:$0 sm:$0xff] }
 0x3a9   : > { %v790_v51 = vmul.f32 1.442695, %v788_v50 }
 0x3ab   : > { %1651 = vpow2.f32 %v790_v51 }
 0x3ae   : > { %v786_v52 = vpop.permute.xlu1 %785 }
 0x3af   : > { %v789_v53 = vsub.f32 %v757_v37, %v786_v52 }
 0x3b1   : > { %v792_v54 = vmul.f32 1.442695, %v789_v53 }
 0x3b3   : > { %1653 = vpow2.f32 %v792_v54 }
 0x3b4   : > { %1655 = vpow2.f32 %v774_v58 }
 0x3b5   : > { %v1652_v55 = vpop.eup %1651  ;;  %1657 = vpow2.f32 %v776_v60 }
 0x3b6   : > { %1388 = vmatmul.mubr.msk.f32.vlgmr.msra.gmra.mrb[6].mxu0 %vm763_vm2, %v1652_v55  ;;  %v798_v56 = vsel %vm763_vm2, %v1652_v55, 0.0 }
 0x3b7   : > { %1507 = vmatpush3.bf16.msra.mxu0 %v1506_v31  ;;  %799 = vadd.xlane.f32.xlu0 %v798_v56  ;;  %v1010_v31 = vld [vmem:[#allocation14 + $0x70] sm:$0xff] }
 0x3b8   : > { %1394 = vmatprep.mubr.msk.f32.mxu0 %vm1914_vm0, %v1912_v0  ;;  %v1512_v0 = vpack.c.bf16 %v999_v4, %v998_v2  ;;  %v1536_v33 = vpack.c.bf16 %v1011_v32, %v1010_v31 }
 0x3ba   : > { %1513 = vmatprep.subr.bf16.mxu1 %v1512_v0 }
 0x3bb   : > { %1515 = vmatpush3.bf16.msra.mxu1 %v1512_v0 }
 0x3bc   : > { %1517 = vmatprep.subr.bf16.mxu1 %v1516_v7 }
 0x3bd   : > { %v1654_v57 = vpop.eup %1653 }
 0x3be   : > { %1395 = vmatmul.mubr.msk.f32.vlgmr.msra.gmra.mrb[8].mxu0 %vm763_vm2, %v1654_v57  ;;  %v801_v59 = vsel %vm763_vm2, %v1654_v57, 0.0  ;;  %v1656_v61 = vpop.eup %1655 }
 0x3bf   : > { %802 = vadd.xlane.f32.xlu1 %v801_v59  ;;  %v1658_v62 = vpop.eup %1657  ;;  %1519 = vmatpush3.bf16.msra.mxu1 %v1516_v7  ;;  %v796_v18 = vmul.f32 %v1656_v61, %v794_v17 }
 0x3c0   : > { %1521 = vmatprep.subr.bf16.mxu1 %v1520_v10  ;;  %v797_v22 = vmul.f32 %v1658_v62, %v795_v21 }
 0x3c3   : > { %1523 = vmatpush3.bf16.msra.mxu1 %v1520_v10 }
 0x3c4   : > { %1525 = vmatprep.subr.bf16.mxu1 %v1524_v13 }
 0x3c7   : > { %1527 = vmatpush3.bf16.msra.mxu1 %v1524_v13 }
 0x3c8   : > { %1529 = vmatprep.subr.bf16.mxu1 %v1528_v16 }
 0x3cb   : > { %1531 = vmatpush3.bf16.msra.mxu1 %v1528_v16 }
 0x3cc   : > { %1533 = vmatprep.subr.bf16.mxu1 %v1532_v30 }
 0x3cd   : > { %813 = vperm.xlu0 %1650, %v1656_v61  }
 0x3cf   : > { %1535 = vmatpush3.bf16.msra.mxu1 %v1532_v30 }
 0x3d0   : > { %818 = vperm.xlu1 %1649, %v1658_v62   ;;  %1537 = vmatprep.subr.bf16.mxu1 %v1536_v33 }
 0x3d3   : > { %1539 = vmatpush3.bf16.msra.mxu1 %v1536_v33 }
 0x444   : > { %v800_v19 = vpop.xlane.xlu0 %799 }
 0x445   : > { %v804_v20 = vadd.f32 %v800_v19, %v796_v18 }
 0x447   : > { %807 = vst.msk [vmem:[#allocation4] sm:$0xff] %vm487_vm1, %v804_v20 }
 0x44c   : > { %v803_v23 = vpop.xlane.xlu1 %802  ;;  %v814_v39 = vpop.permute.xlu0 %813 }
 0x44d   : > { %v805_v24 = vadd.f32 %v803_v23, %v797_v22  ;;  %v821_v40 = vmul.f32 0.0, %v814_v39 }
 0x44e   : > { %v978_v25 = vld [vmem:[#allocation4] sm:$0xff] }
 0x44f   : > { %808 = vst.msk [vmem:[#allocation4 + $0x8] sm:$0xff] %vm487_vm1, %v805_v24  ;;  %1659 = vrcp.f32 %v978_v25 }
 0x450   : > { %v819_v44 = vpop.permute.xlu1 %818 }
 0x451   : > { %v822_v45 = vmul.f32 0.0, %v819_v44 }
 0x456   : > { %v979_v26 = vld [vmem:[#allocation4 + $0x8] sm:$0xff] }
 0x457   : > { %1661 = vrcp.f32 %v979_v26 }
 0x459   : > { %v1660_v27 = vpop.eup %1659 }
 0x45a   : > { %986 = vperm.xlu0 %1650, %v1660_v27  }
 0x461   : > { %v1662_v34 = vpop.eup %1661 }
 0x462   : > { %991 = vperm.xlu0 %1650, %v1662_v34  }
 0x489   : > { %v892_v35 = vpop.f32.mrb[6].mxu0 }
 0x48a   : > { %v1389_v36 = vpop.f32.mrb[7].mxu0  ;;  %v969_v41 = vadd.f32 %v892_v35, %v821_v40 }
 0x491   : > { %v965_v37 = vpop.f32.mrb[8].mxu0 }
 0x492   : > { %v1396_v38 = vpop.f32.mrb[9].mxu0  ;;  %v970_v46 = vadd.f32 %v965_v37, %v822_v45 }
 0x4d9   : > { %v987_v42 = vpop.permute.xlu0 %986 }
 0x4da   : > { %v994_v43 = vmul.f32 %v987_v42, %v969_v41 }
 0x4dc   : > { %1429 = vmatprep.mubr.f32.mxu1 %v994_v43 }
 0x4e1   : > { %v992_v47 = vpop.permute.xlu0 %991 }
 0x4e2   : > { %v995_v48 = vmul.f32 %v992_v47, %v970_v46 }
 0x4e4   : > { %1430 = vmatmul.mubr.f32.vlgmr.msra.gmra.mrb[8].mxu1 %v995_v48 }
 0x5b7   : > { %v1431_v50 = vpop.f32.mrb[8].mxu1 }
 0x5b8   : > { %v1091_v51 = vadd.f32 %v1431_v50, %v1276_v49  ;;  %v1085_v52 = vpop.f32.mrb[9].mxu1 }
 0x5b9   : > { %v1086_v53 = vadd.f32 %v1276_v49, %v1085_v52 }
 0x5ba   : > { %1095 = vst [vmem:[%s381_s27 + $0x8] sm:$0xff] %v1091_v51 }
 0x5bb   : > { %1094 = vst [vmem:[%s381_s27] sm:$0xff] %v1086_v53 }
 0x5bc   : > { %1820 = shalt.err (!%p1817_p5)
}
 0x5bd   : > { %s1821_s4 = scalar_lea.hbm %s2289_s20, 256  ;;  %s1825_s0 = scalar_lea.hbm %s2344_s6, 512 }
 0x5be   : > { %p1822_p12 = scmp.ne.s32.totalorder %s2289_s20, %s1821_s4  ;;  %p1826_p9 = scmp.lt.u32.totalorder %s2289_s20, %s2344_s6 }
 0x5bf   : > { %p1827_p0 = scmp.lt.u32.totalorder %s1825_s0, %s1821_s4  ;;  %p1829_p4 = scmp.lt.u32.totalorder %s1821_s4, %s2289_s20 }
 0x5c0   : > { %p1823_p6 = pnand %p1822_p12, %p2111_p3 }
 0x5c1   : > { %p1828_p2 = por %p1827_p0, %p1826_p9 }
 0x5c2   : > { %p1824_p7 = pneg %p1823_p6 }
 0x5c3   : > { %p1830_p8 = por %p1829_p4, %p1828_p2 }
 0x5c5   : > { %p1831_p1 = pnand %p1830_p8, %p1824_p7 }
 0x5c7   : > { %1834 = shalt.err (!%p1831_p1)
}
 0x5c8   : > { %s1918_s13 = smov 128   ;;  %s1919_s27 = smov 8  }
 0x5c9   : > { %1556 = dma.vmem_to_hbm [thread:$0]  (%p2111_p3), %s2284_s29, 256, %s2289_s20, %s1097_s3, %s1918_s13, %s1918_s13, %s1919_s27  }
 0x5ca PF: > { %s2382_s2 = sld [smem:[#allocation21_spill]]  ;;  %s1126_s9 = sand.u32 1, %s1881_s21  }
 0x5cb   : > { %p2384_p10 = scmp.ge.s32.totalorder %s1901_s26, 2  ;;  %s1127_s11 = scalar_lea.sflag [#allocation8], %s1126_s9 }
 0x5d0   : > { %p2383_p13 = scmp.ne.s32.totalorder %s2382_s2, 0 }
 0x5d2   : > { %p1576_p11 = pnand %p2384_p10, %p2383_p13 }
 0x5d4   : > { %1876 = dma.done.wait (!%p1576_p11), %s1127_s11, 256  }
 0x5d5   : > { %1878 = vsyncadd (!%p1576_p11), %s1127_s11, 4294967040  ;;  %s26_s26 = sadd.s32 1, %s1901_s26   ;;  %s2385_s14 = sld [smem:[#allocation22_spill]] }
 0x5d6   : > { %p23_p5 = scmp.ge.s32.totalorder %s26_s26, 4   ;;  %s2386_s21 = smov %s1885_s22 }
 0x5d7   : > { %s2387_s22 = smov %s1889_s23  ;;  %s2388_s23 = smov %s2123_s19 }
 0x5d8   : > { %s2389_s24 = smov %s1897_s25  ;;  %25 = sbr.rel (!%p23_p5) target bundleno = 14 (0xe), region = 122 }
 0x5db   : > { %s2390_s25 = smov %s2385_s14 }
 0x5df   :  { %1132 = vsyncpa [#allocation7], 1 }
 0x5e0   :  { %1134 = vsyncpa [#allocation7 + $0x1], 1 }
 0x5e1   :  { %1135 = vsyncpa [#allocation10], 1 }
 0x5e2   :  { %1137 = vsyncpa [#allocation10 + $0x1], 1 }
 0x5e3   :  { %1138 = vsyncpa [#allocation13], 1 }
 0x5e4   :  { %1139 = vsyncpa [#allocation8], 1 }
 0x5e5   :  { %1141 = vsyncpa [#allocation8 + $0x1], 1 }

</bundles_post_ra>
